<compile_context>
chip_gen: v7x
topology: tpu7x:2x2x1
jax: 0.10.0
libtpu: 0.0.40
codegen_flags: <defaults>
</compile_context>

<pallas_src>
import jax
import jax.numpy as jnp
from jax.experimental import pallas as pl
from jax.experimental.pallas import tpu as pltpu

BN_EPS = 1e-5


def crossnet_kernel(x_ref, w_ref, b_ref, o_ref):
    # x_ref: (B, D) f32, w_ref/b_ref: (L, D) f32, o_ref: (B, D) f32
    x0 = x_ref[...]                        # (B, D) -- fixed "x" term
    out = x0                               # (B, D) -- running output
    B = x_ref.shape[0]
    num_layers = w_ref.shape[0]
    inv_b = jnp.float32(1.0 / B)

    # Hoist parameter loads: L (<=4) rows each fit in one sublane-padded vreg,
    # so two full loads replace 2L single-row loads in the serial prologue.
    w_all = w_ref[...]                     # (L, D)
    b_all = b_ref[...]                     # (L, D)

    # L is small: static Python unroll keeps full LLO scheduler visibility.
    for i in range(num_layers):
        w = w_all[i:i + 1, :]              # (1, D) static in-register slice
        b = b_all[i:i + 1, :]              # (1, D)

        # torch.matmul(bmm(x, out^T), w) == x0 * (out . w) per batch row.
        # VPU mul + XLU lane reduce; MXU at N=1 would be ~1/128 utilized.
        dot = jnp.sum(out * w, axis=-1, keepdims=True)    # (B, 1)
        out = x0 * dot + b + out                          # (B, D)

        # BatchNorm1d(affine=False), training mode: batch mean, biased var,
        # two-pass centered variance (numerically matches PyTorch).
        mean = jnp.sum(out, axis=0, keepdims=True) * inv_b       # (1, D)
        centered = out - mean                                    # (B, D)
        var = jnp.sum(centered * centered, axis=0, keepdims=True) * inv_b
        out = centered * jax.lax.rsqrt(var + BN_EPS)

    o_ref[...] = out


@jax.jit
def crossnet_forward(x, weight_w, weight_b):
    """x: (B, D) float32, weight_w/weight_b: (L, D) float32."""
    B, D = x.shape
    L = weight_w.shape[0]

    x = x.astype(jnp.float32)
    weight_w = weight_w.astype(jnp.float32)
    weight_b = weight_b.astype(jnp.float32)

    # Advisory cost hint so XLA doesn't treat the custom call as fully opaque.
    flops = int(8 * L * B * D)
    bytes_accessed = int(4 * (2 * B * D + 2 * L * D))
    cost = pl.CostEstimate(
        flops=flops, transcendentals=int(L * D), bytes_accessed=bytes_accessed
    )

    return pl.pallas_call(
        crossnet_kernel,
        out_shape=jax.ShapeDtypeStruct((B, D), jnp.float32),
        in_specs=[
            pl.BlockSpec(memory_space=pltpu.MemorySpace.VMEM),
            pl.BlockSpec(memory_space=pltpu.MemorySpace.VMEM),
            pl.BlockSpec(memory_space=pltpu.MemorySpace.VMEM),
        ],
        out_specs=pl.BlockSpec(memory_space=pltpu.MemorySpace.VMEM),
        compiler_params=pltpu.CompilerParams(
            # Tiny working set (a few KiB); modest explicit budget is safe on
            # v5e/v6e (128 MiB) and v7x (64 MiB physical, 32 MiB scoped).
            vmem_limit_bytes=16 * 1024 * 1024,
        ),
        cost_estimate=cost,
    )(x, weight_w, weight_b)


def crossnet_reference(x, weight_w, weight_b):
    """Pure-JAX reference mirroring the PyTorch forward (sanity check)."""
    x0 = x
    out = x
    for i in range(weight_w.shape[0]):
        dot = jnp.sum(out * weight_w[i], axis=-1, keepdims=True)
        out = x0 * dot + weight_b[i] + out
        mean = jnp.mean(out, axis=0, keepdims=True)
        var = jnp.mean((out - mean) ** 2, axis=0, keepdims=True)
        out = (out - mean) * jax.lax.rsqrt(var + BN_EPS)
    return out


if __name__ == "__main__":
    # Shapes consistent with the module: input_feature_num=32, cross_layer=2
    # -> self.cross_layer = 3 layers.
    B, D = 8, 32
    cross_layer = 2
    L = cross_layer + 1

    key = jax.random.PRNGKey(0)
    kx, kw, kb = jax.random.split(key, 3)

    # Deterministic "normal_"-style init for inputs and parameters.
    x = jax.random.normal(kx, (B, D), dtype=jnp.float32)
    weight_w = jax.random.normal(kw, (L, D), dtype=jnp.float32)
    weight_b = jax.random.normal(kb, (L, D), dtype=jnp.float32)

    out = crossnet_forward(x, weight_w, weight_b)
    out = jax.block_until_ready(out)

    ref = crossnet_reference(x, weight_w, weight_b)
    assert out.shape == (B, D)
    assert jnp.allclose(out, ref, atol=2e-4, rtol=2e-4)

    print("KERNEL_OK")
</pallas_src>

<mosaic_0001>
module attributes {stable_mosaic.version = 11 : i64} {
  func.func @crossnet_kernel(%arg0: memref<8x32xf32, #tpu.memory_space<vmem>>, %arg1: memref<3x32xf32, #tpu.memory_space<vmem>>, %arg2: memref<3x32xf32, #tpu.memory_space<vmem>>, %arg3: memref<8x32xf32, #tpu.memory_space<vmem>>) attributes {dimension_semantics = [], scalar_prefetch = 0 : i64, scratch_operands = 0 : i64, tpu.core_type = #tpu.core_type<tc>} {
    %c0 = arith.constant 0 : index
    %c0_0 = arith.constant 0 : index
    %0 = vector.load %arg0[%c0, %c0_0] : memref<8x32xf32, #tpu.memory_space<vmem>>, vector<8x32xf32>
    %c0_1 = arith.constant 0 : index
    %c0_2 = arith.constant 0 : index
    %1 = vector.load %arg1[%c0_1, %c0_2] : memref<3x32xf32, #tpu.memory_space<vmem>>, vector<3x32xf32>
    %c0_3 = arith.constant 0 : index
    %c0_4 = arith.constant 0 : index
    %2 = vector.load %arg2[%c0_3, %c0_4] : memref<3x32xf32, #tpu.memory_space<vmem>>, vector<3x32xf32>
    %3 = vector.extract_strided_slice %1 {offsets = [0, 0], sizes = [1, 32], strides = [1, 1]} : vector<3x32xf32> to vector<1x32xf32>
    %4 = vector.extract_strided_slice %2 {offsets = [0, 0], sizes = [1, 32], strides = [1, 1]} : vector<3x32xf32> to vector<1x32xf32>
    %5 = vector.broadcast %3 : vector<1x32xf32> to vector<8x32xf32>
    %6 = arith.mulf %0, %5 : vector<8x32xf32>
    %cst = arith.constant dense<0.000000e+00> : vector<8xf32>
    %7 = vector.multi_reduction <add>, %6, %cst [1] : vector<8x32xf32> to vector<8xf32>
    %8 = vector.shape_cast %7 : vector<8xf32> to vector<8x1xf32>
    %9 = vector.broadcast %8 : vector<8x1xf32> to vector<8x32xf32>
    %10 = arith.mulf %0, %9 : vector<8x32xf32>
    %11 = vector.broadcast %4 : vector<1x32xf32> to vector<8x32xf32>
    %12 = arith.addf %10, %11 : vector<8x32xf32>
    %13 = arith.addf %12, %0 : vector<8x32xf32>
    %cst_5 = arith.constant dense<0.000000e+00> : vector<32xf32>
    %14 = vector.multi_reduction <add>, %13, %cst_5 [0] : vector<8x32xf32> to vector<32xf32>
    %15 = vector.shape_cast %14 : vector<32xf32> to vector<1x32xf32>
    %cst_6 = arith.constant 1.250000e-01 : f32
    %16 = vector.broadcast %cst_6 : f32 to vector<1x32xf32>
    %17 = arith.mulf %15, %16 : vector<1x32xf32>
    %18 = vector.broadcast %17 : vector<1x32xf32> to vector<8x32xf32>
    %19 = arith.subf %13, %18 : vector<8x32xf32>
    %20 = arith.mulf %19, %19 : vector<8x32xf32>
    %cst_7 = arith.constant dense<0.000000e+00> : vector<32xf32>
    %21 = vector.multi_reduction <add>, %20, %cst_7 [0] : vector<8x32xf32> to vector<32xf32>
    %22 = vector.shape_cast %21 : vector<32xf32> to vector<1x32xf32>
    %cst_8 = arith.constant 1.250000e-01 : f32
    %23 = vector.broadcast %cst_8 : f32 to vector<1x32xf32>
    %24 = arith.mulf %22, %23 : vector<1x32xf32>
    %cst_9 = arith.constant 9.99999974E-6 : f32
    %25 = vector.broadcast %cst_9 : f32 to vector<1x32xf32>
    %26 = arith.addf %24, %25 : vector<1x32xf32>
    %27 = math.rsqrt %26 : vector<1x32xf32>
    %28 = vector.broadcast %27 : vector<1x32xf32> to vector<8x32xf32>
    %29 = arith.mulf %19, %28 : vector<8x32xf32>
    %30 = vector.extract_strided_slice %1 {offsets = [1, 0], sizes = [1, 32], strides = [1, 1]} : vector<3x32xf32> to vector<1x32xf32>
    %31 = vector.extract_strided_slice %2 {offsets = [1, 0], sizes = [1, 32], strides = [1, 1]} : vector<3x32xf32> to vector<1x32xf32>
    %32 = vector.broadcast %30 : vector<1x32xf32> to vector<8x32xf32>
    %33 = arith.mulf %29, %32 : vector<8x32xf32>
    %cst_10 = arith.constant dense<0.000000e+00> : vector<8xf32>
    %34 = vector.multi_reduction <add>, %33, %cst_10 [1] : vector<8x32xf32> to vector<8xf32>
    %35 = vector.shape_cast %34 : vector<8xf32> to vector<8x1xf32>
    %36 = vector.broadcast %35 : vector<8x1xf32> to vector<8x32xf32>
    %37 = arith.mulf %0, %36 : vector<8x32xf32>
    %38 = vector.broadcast %31 : vector<1x32xf32> to vector<8x32xf32>
    %39 = arith.addf %37, %38 : vector<8x32xf32>
    %40 = arith.addf %39, %29 : vector<8x32xf32>
    %cst_11 = arith.constant dense<0.000000e+00> : vector<32xf32>
    %41 = vector.multi_reduction <add>, %40, %cst_11 [0] : vector<8x32xf32> to vector<32xf32>
    %42 = vector.shape_cast %41 : vector<32xf32> to vector<1x32xf32>
    %cst_12 = arith.constant 1.250000e-01 : f32
    %43 = vector.broadcast %cst_12 : f32 to vector<1x32xf32>
    %44 = arith.mulf %42, %43 : vector<1x32xf32>
    %45 = vector.broadcast %44 : vector<1x32xf32> to vector<8x32xf32>
    %46 = arith.subf %40, %45 : vector<8x32xf32>
    %47 = arith.mulf %46, %46 : vector<8x32xf32>
    %cst_13 = arith.constant dense<0.000000e+00> : vector<32xf32>
    %48 = vector.multi_reduction <add>, %47, %cst_13 [0] : vector<8x32xf32> to vector<32xf32>
    %49 = vector.shape_cast %48 : vector<32xf32> to vector<1x32xf32>
    %cst_14 = arith.constant 1.250000e-01 : f32
    %50 = vector.broadcast %cst_14 : f32 to vector<1x32xf32>
    %51 = arith.mulf %49, %50 : vector<1x32xf32>
    %cst_15 = arith.constant 9.99999974E-6 : f32
    %52 = vector.broadcast %cst_15 : f32 to vector<1x32xf32>
    %53 = arith.addf %51, %52 : vector<1x32xf32>
    %54 = math.rsqrt %53 : vector<1x32xf32>
    %55 = vector.broadcast %54 : vector<1x32xf32> to vector<8x32xf32>
    %56 = arith.mulf %46, %55 : vector<8x32xf32>
    %57 = vector.extract_strided_slice %1 {offsets = [2, 0], sizes = [1, 32], strides = [1, 1]} : vector<3x32xf32> to vector<1x32xf32>
    %58 = vector.extract_strided_slice %2 {offsets = [2, 0], sizes = [1, 32], strides = [1, 1]} : vector<3x32xf32> to vector<1x32xf32>
    %59 = vector.broadcast %57 : vector<1x32xf32> to vector<8x32xf32>
    %60 = arith.mulf %56, %59 : vector<8x32xf32>
    %cst_16 = arith.constant dense<0.000000e+00> : vector<8xf32>
    %61 = vector.multi_reduction <add>, %60, %cst_16 [1] : vector<8x32xf32> to vector<8xf32>
    %62 = vector.shape_cast %61 : vector<8xf32> to vector<8x1xf32>
    %63 = vector.broadcast %62 : vector<8x1xf32> to vector<8x32xf32>
    %64 = arith.mulf %0, %63 : vector<8x32xf32>
    %65 = vector.broadcast %58 : vector<1x32xf32> to vector<8x32xf32>
    %66 = arith.addf %64, %65 : vector<8x32xf32>
    %67 = arith.addf %66, %56 : vector<8x32xf32>
    %cst_17 = arith.constant dense<0.000000e+00> : vector<32xf32>
    %68 = vector.multi_reduction <add>, %67, %cst_17 [0] : vector<8x32xf32> to vector<32xf32>
    %69 = vector.shape_cast %68 : vector<32xf32> to vector<1x32xf32>
    %cst_18 = arith.constant 1.250000e-01 : f32
    %70 = vector.broadcast %cst_18 : f32 to vector<1x32xf32>
    %71 = arith.mulf %69, %70 : vector<1x32xf32>
    %72 = vector.broadcast %71 : vector<1x32xf32> to vector<8x32xf32>
    %73 = arith.subf %67, %72 : vector<8x32xf32>
    %74 = arith.mulf %73, %73 : vector<8x32xf32>
    %cst_19 = arith.constant dense<0.000000e+00> : vector<32xf32>
    %75 = vector.multi_reduction <add>, %74, %cst_19 [0] : vector<8x32xf32> to vector<32xf32>
    %76 = vector.shape_cast %75 : vector<32xf32> to vector<1x32xf32>
    %cst_20 = arith.constant 1.250000e-01 : f32
    %77 = vector.broadcast %cst_20 : f32 to vector<1x32xf32>
    %78 = arith.mulf %76, %77 : vector<1x32xf32>
    %cst_21 = arith.constant 9.99999974E-6 : f32
    %79 = vector.broadcast %cst_21 : f32 to vector<1x32xf32>
    %80 = arith.addf %78, %79 : vector<1x32xf32>
    %81 = math.rsqrt %80 : vector<1x32xf32>
    %82 = vector.broadcast %81 : vector<1x32xf32> to vector<8x32xf32>
    %83 = arith.mulf %73, %82 : vector<8x32xf32>
    %c0_22 = arith.constant 0 : index
    %c0_23 = arith.constant 0 : index
    %84 = vector.load %arg3[%c0_22, %c0_23] : memref<8x32xf32, #tpu.memory_space<vmem>>, vector<8x32xf32>
    tpu.vector_store %arg3[%c0_22, %c0_23], %83 {strides = array<i32>} : memref<8x32xf32, #tpu.memory_space<vmem>>, vector<8x32xf32>,
    return
  }
}

</mosaic_0001>

<bundles_post_ra>
// kernel: crossnet_forward.1
= control target key start
LH: loop header
LB: loop body
LE: loop exit
PB: predicated region body
PF: predicated region fallthrough
CT: control target
= control target key end

     0   :  { %8 = vsyncpa [#allocation3], 0  ;;  %s343_s0 = inlined_call_operand.hbm [shape: f32[8,32], index: 0, kind: input, shape index: {}]   ;;  %s344_s1 = inlined_call_operand.hbm [shape: f32[3,32], index: 1, kind: input, shape index: {}]   ;;  %s345_s2 = inlined_call_operand.vmem [shape: f32[3,32], index: 2, kind: input, shape index: {}]   ;;  %s346_s3 = inlined_call_operand.hbm [shape: f32[8,32], index: 3, kind: output, shape index: {}]  }
   0x1   :  { %9 = vsyncpa [#allocation6], 0 }
   0x2   :  { %10 = vsyncpa [#allocation4], 0  ;;  %s249_s12 = smov [#allocation2]   ;;  %s250_s14 = smov [#allocation5]  }
   0x3   :  { %s17_s13 = sshll.u32 %s249_s12, 4  ;;  %s27_s15 = sshll.u32 %s250_s14, 4  ;;  %s18_s13 = int_to_ptr.vmem [resolvable:$true] %s17_s13  ;;  %s28_s15 = int_to_ptr.vmem [resolvable:$true] %s27_s15 }
   0x4   :  { %s177_s18 = scalar_lea.hbm %s343_s0, 128 }
   0x5   :  { %p178_p0 = scmp.ne.s32.totalorder %s343_s0, %s177_s18  ;;  %p181_p1 = scmp.lt.u32.totalorder %s177_s18, %s343_s0 }
   0x7   :  { %p183_p2 = pnand %p181_p1, %p178_p0 }
   0x9   :  { %186 = shalt.err (!%p183_p2)
}
   0xa   :  { %s187_s23 = scalar_lea.vmem %s18_s13, 128  ;;  %p192_p4 = scmp.lt.s32.totalorder %s18_s13, %s18_s13 }
   0xb   :  { %p188_p3 = scmp.ne.s32.totalorder %s18_s13, %s187_s23  ;;  %p193_p5 = scmp.lt.s32.totalorder %s187_s23, %s187_s23 }
   0xd   :  { %p194_p6 = por %p193_p5, %p192_p4 }
   0xf   :  { %p195_p7 = pnand %p194_p6, %p188_p3 }
  0x11   :  { %198 = shalt.err (!%p195_p7)
}
  0x12   :  { %20 = dma.hbm_to_vmem [thread:$0]  %s343_s0, 128, %s18_s13, [#allocation3]  }
  0x13   :  { %s199_s28 = scalar_lea.hbm %s344_s1, 64 }
  0x14   :  { %p200_p8 = scmp.ne.s32.totalorder %s344_s1, %s199_s28  ;;  %p203_p9 = scmp.lt.u32.totalorder %s199_s28, %s344_s1 }
  0x16   :  { %p205_p10 = pnand %p203_p9, %p200_p8 }
  0x18   :  { %208 = shalt.err (!%p205_p10)
}
  0x19   :  { %s209_s6 = scalar_lea.vmem %s28_s15, 64  ;;  %p214_p12 = scmp.lt.s32.totalorder %s28_s15, %s28_s15 }
  0x1a   :  { %p210_p11 = scmp.ne.s32.totalorder %s28_s15, %s209_s6  ;;  %p215_p13 = scmp.lt.s32.totalorder %s209_s6, %s209_s6 }
  0x1c   :  { %p216_p0 = por %p215_p13, %p214_p12 }
  0x1e   :  { %p217_p1 = pnand %p216_p0, %p210_p11 }
  0x20   :  { %220 = shalt.err (!%p217_p1)
}
  0x21   :  { %30 = dma.hbm_to_vmem [thread:$0]  %s344_s1, 64, %s28_s15, [#allocation6]  }
  0x22   :  { %243 = dma.done.wait [#allocation3], 128  }
  0x23   :  { %244 = vsyncadd [#allocation3], 4294967168 }
  0x24   :  { %245 = dma.done.wait [#allocation6], 64  }
  0x25   :  { %246 = vsyncadd [#allocation6], 4294967232  ;;  %v42_v0 = vlaneseq  ;;  %v299_v3 = vld [vmem:[#allocation2] sm:$0xff]  ;;  %v301_v4 = vld [vmem:[#allocation5] sm:$0x7]  ;;  %vm47_vm0 = vcmask 261120  }
  0x26   :  { %v309_v8 = vld [vmem:[%s345_s2] sm:$0x7]  ;;  %s251_s2 = smov [#allocation7]  }
  0x27   :  { %v296_v1 = vshrl.u32 %v42_v0, 7  ;;  %s158_s9 = sshll.u32 %s251_s2, 4  ;;  %s159_s9 = int_to_ptr.vmem [resolvable:$true] %s158_s9 }
  0x28   :  { %s221_s10 = scalar_lea.vmem %s159_s9, 128  ;;  %p226_p3 = scmp.lt.s32.totalorder %s159_s9, %s159_s9 }
  0x29   :  { %v44_v2 = vsub.s32 0, %v296_v1  ;;  %v81_v33 = vsub.s32 1, %v296_v1  ;;  %v117_v63 = vsub.s32 2, %v296_v1  ;;  %p222_p2 = scmp.ne.s32.totalorder %s159_s9, %s221_s10  ;;  %p227_p4 = scmp.lt.s32.totalorder %s221_s10, %s221_s10 }
  0x2b   :  { %v45_v5 = vrot.slane %v301_v4, %v44_v2  ;;  %v55_v9 = vrot.slane %v309_v8, %v44_v2  ;;  %v82_v34 = vrot.slane %v301_v4, %v81_v33  ;;  %v91_v39 = vrot.slane %v309_v8, %v81_v33  ;;  %p228_p5 = por %p227_p4, %p226_p3 }
  0x2c   :  { %v118_v0 = vrot.slane %v301_v4, %v117_v63 }
  0x2d   :  { %v46_v6 = vmul.f32 %v45_v5, %v299_v3  ;;  %p229_p6 = pnand %p228_p5, %p222_p2 }
  0x2f   :  { %v48_v7 = vsel %vm47_vm0, %v46_v6, 0.0 }
  0x30   :  { %49 = vadd.xlane.f32.xlu0 %v48_v7 }
  0xbd   :  { %v50_v10 = vpop.xlane.xlu0 %49 }
  0xbe   :  { %v51_v11 = vmul.f32 %v50_v10, %v299_v3 }
  0xc0   :  { %v56_v12 = vadd.f32 %v55_v9, %v51_v11  ;;  %v127_v9 = vrot.slane %v309_v8, %v117_v63 }
  0xc2   :  { %v57_v13 = vadd.f32 %v56_v12, %v299_v3 }
  0xc4   :  { %v58_v14 = vsel %vm47_vm0, %v57_v13, 0.0 }
  0xc5   :  { %v59_v15 = vrot.slane %v58_v14, 4 }
  0xc7   :  { %v60_v16 = vadd.f32 %v59_v15, %v58_v14 }
  0xc9   :  { %v61_v17 = vrot.slane %v60_v16, 2 }
  0xcb   :  { %v62_v18 = vadd.f32 %v61_v17, %v60_v16 }
  0xcd   :  { %v63_v19 = vrot.slane %v62_v18, 1 }
  0xcf   :  { %v64_v20 = vadd.f32 %v63_v19, %v62_v18 }
  0xd1   :  { %v65_v21 = vmul.f32 0.125, %v64_v20 }
  0xd3   :  { %v66_v22 = vsub.f32 %v57_v13, %v65_v21 }
  0xd5   :  { %v67_v23 = vmul.f32 %v66_v22, %v66_v22 }
  0xd7   :  { %v68_v24 = vsel %vm47_vm0, %v67_v23, 0.0 }
  0xd8   :  { %v69_v25 = vrot.slane %v68_v24, 4 }
  0xda   :  { %v70_v26 = vadd.f32 %v69_v25, %v68_v24 }
  0xdc   :  { %v71_v27 = vrot.slane %v70_v26, 2 }
  0xde   :  { %v72_v28 = vadd.f32 %v71_v27, %v70_v26 }
  0xe0   :  { %v73_v29 = vrot.slane %v72_v28, 1 }
  0xe2   :  { %v74_v30 = vadd.f32 %v73_v29, %v72_v28 }
  0xe4   :  { %v75_v31 = vmul.f32 0.125, %v74_v30 }
  0xe6   :  { %v76_v32 = vadd.f32 1e-05, %v75_v31 }
  0xe8   :  { %171 = vrsqrt.f32 %v76_v32 }
  0xf2   :  { %v172_v35 = vpop.eup %171 }
  0xf3   :  { %v78_v36 = vmul.f32 %v172_v35, %v66_v22 }
  0xf5   :  { %v83_v37 = vmul.f32 %v82_v34, %v78_v36 }
  0xf7   :  { %v84_v38 = vsel %vm47_vm0, %v83_v37, 0.0 }
  0xf8   :  { %85 = vadd.xlane.f32.xlu0 %v84_v38 }
 0x185   :  { %v86_v40 = vpop.xlane.xlu0 %85 }
 0x186   :  { %v87_v41 = vmul.f32 %v86_v40, %v299_v3 }
 0x188   :  { %v92_v42 = vadd.f32 %v91_v39, %v87_v41 }
 0x18a   :  { %v93_v43 = vadd.f32 %v92_v42, %v78_v36 }
 0x18c   :  { %v94_v44 = vsel %vm47_vm0, %v93_v43, 0.0 }
 0x18d   :  { %v95_v45 = vrot.slane %v94_v44, 4 }
 0x18f   :  { %v96_v46 = vadd.f32 %v95_v45, %v94_v44 }
 0x191   :  { %v97_v47 = vrot.slane %v96_v46, 2 }
 0x193   :  { %v98_v48 = vadd.f32 %v97_v47, %v96_v46 }
 0x195   :  { %v99_v49 = vrot.slane %v98_v48, 1 }
 0x197   :  { %v100_v50 = vadd.f32 %v99_v49, %v98_v48 }
 0x199   :  { %v101_v51 = vmul.f32 0.125, %v100_v50 }
 0x19b   :  { %v102_v52 = vsub.f32 %v93_v43, %v101_v51 }
 0x19d   :  { %v103_v53 = vmul.f32 %v102_v52, %v102_v52 }
 0x19f   :  { %v104_v54 = vsel %vm47_vm0, %v103_v53, 0.0 }
 0x1a0   :  { %v105_v55 = vrot.slane %v104_v54, 4 }
 0x1a2   :  { %v106_v56 = vadd.f32 %v105_v55, %v104_v54 }
 0x1a4   :  { %v107_v57 = vrot.slane %v106_v56, 2 }
 0x1a6   :  { %v108_v58 = vadd.f32 %v107_v57, %v106_v56 }
 0x1a8   :  { %v109_v59 = vrot.slane %v108_v58, 1 }
 0x1aa   :  { %v110_v60 = vadd.f32 %v109_v59, %v108_v58 }
 0x1ac   :  { %v111_v61 = vmul.f32 0.125, %v110_v60 }
 0x1ae   :  { %v112_v62 = vadd.f32 1e-05, %v111_v61 }
 0x1b0   :  { %173 = vrsqrt.f32 %v112_v62 }
 0x1ba   :  { %v174_v2 = vpop.eup %173 }
 0x1bb   :  { %v114_v5 = vmul.f32 %v174_v2, %v102_v52 }
 0x1bd   :  { %v119_v6 = vmul.f32 %v118_v0, %v114_v5 }
 0x1bf   :  { %v120_v7 = vsel %vm47_vm0, %v119_v6, 0.0 }
 0x1c0   :  { %121 = vadd.xlane.f32.xlu1 %v120_v7 }
 0x24d   :  { %v122_v10 = vpop.xlane.xlu1 %121 }
 0x24e   :  { %v123_v11 = vmul.f32 %v122_v10, %v299_v3 }
 0x250   :  { %v128_v12 = vadd.f32 %v127_v9, %v123_v11 }
 0x252   :  { %v129_v13 = vadd.f32 %v128_v12, %v114_v5 }
 0x254   :  { %v130_v14 = vsel %vm47_vm0, %v129_v13, 0.0 }
 0x255   :  { %v131_v15 = vrot.slane %v130_v14, 4 }
 0x257   :  { %v132_v16 = vadd.f32 %v131_v15, %v130_v14 }
 0x259   :  { %v133_v1 = vrot.slane %v132_v16, 2 }
 0x25b   :  { %v134_v17 = vadd.f32 %v133_v1, %v132_v16 }
 0x25d   :  { %v135_v4 = vrot.slane %v134_v17, 1 }
 0x25f   :  { %v136_v18 = vadd.f32 %v135_v4, %v134_v17 }
 0x261   :  { %v137_v19 = vmul.f32 0.125, %v136_v18 }
 0x263   :  { %v138_v20 = vsub.f32 %v129_v13, %v137_v19 }
 0x265   :  { %v139_v21 = vmul.f32 %v138_v20, %v138_v20 }
 0x267   :  { %v140_v22 = vsel %vm47_vm0, %v139_v21, 0.0 }
 0x268   :  { %v141_v23 = vrot.slane %v140_v22, 4 }
 0x26a   :  { %v142_v8 = vadd.f32 %v141_v23, %v140_v22 }
 0x26c   :  { %v143_v24 = vrot.slane %v142_v8, 2 }
 0x26e   :  { %v144_v25 = vadd.f32 %v143_v24, %v142_v8 }
 0x270   :  { %v145_v3 = vrot.slane %v144_v25, 1 }
 0x272   :  { %v146_v26 = vadd.f32 %v145_v3, %v144_v25 }
 0x274   :  { %v147_v27 = vmul.f32 0.125, %v146_v26 }
 0x276   :  { %v148_v28 = vadd.f32 1e-05, %v147_v27 }
 0x278   :  { %175 = vrsqrt.f32 %v148_v28 }
 0x282   :  { %v176_v29 = vpop.eup %175 }
 0x283   :  { %v150_v30 = vmul.f32 %v176_v29, %v138_v20 }
 0x285   :  { %151 = vst.msk [vmem:[#allocation7] sm:$0xff] %vm47_vm0, %v150_v30 }
 0x286   :  { %232 = shalt.err (!%p229_p6)
}
 0x287   :  { %s233_s13 = scalar_lea.hbm %s346_s3, 128 }
 0x288   :  { %p234_p7 = scmp.ne.s32.totalorder %s346_s3, %s233_s13  ;;  %p237_p8 = scmp.lt.u32.totalorder %s233_s13, %s346_s3 }
 0x28a   :  { %p239_p9 = pnand %p237_p8, %p234_p7 }
 0x28c   :  { %242 = shalt.err (!%p239_p9)
}
 0x28d   :  { %161 = dma.vmem_to_hbm [thread:$0]  %s159_s9, 128, %s346_s3, [#allocation4]  }
 0x28e   :  { %247 = dma.done.wait [#allocation4], 128  }
 0x28f   :  { %248 = vsyncadd [#allocation4], 4294967168 }
 0x290   :  { %165 = vsyncpa [#allocation3], 1 }
 0x291   :  { %166 = vsyncpa [#allocation6], 1 }
 0x292   :  { %167 = vsyncpa [#allocation4], 1 }

</bundles_post_ra>
